<compile_context>
chip_gen: v7x
topology: tpu7x:2x2x1
jax: 0.10.0
libtpu: 0.0.40
codegen_flags: <defaults>
</compile_context>

<pallas_src>
import numpy as np
import jax
import jax.numpy as jnp
from jax.experimental import pallas as pl
from jax.experimental.pallas import tpu as pltpu


def ricker_fft_conv_kernel(sig_ref, x_ref, ffwd_ref, invc_ref, invms_ref, out_ref):
    """sig_ref:   (C, 1)  raw sigma parameter (f32)
       x_ref:     (NB, L, C) input tile in original 'b l c' layout (f32)
       ffwd_ref:  (L, 2L)  bf16 fused forward DFT  [Re | Im]
       invc_ref:  (L, L)   bf16 inverse-DFT cos table, 1/L folded in
       invms_ref: (L, L)   bf16 inverse-DFT (-sin) table, 1/L folded in
       out_ref:   (NB, L, C) output tile in 'b l c' layout (f32)"""
    NB, L, C = x_ref.shape

    # --- Ricker wavelet w[c, n], t = linspace(-1, 1, L) ----------------------
    n = jax.lax.broadcasted_iota(jnp.int32, (1, L), 1).astype(jnp.float32)
    t = -1.0 + (2.0 / (L - 1)) * n                        # (1, L)
    sig = jnp.exp(sig_ref[...])                           # (C, 1)  sigma_exp
    term1 = 2.0 / (jnp.sqrt(3.0 * sig + 1e-6) * (np.pi ** 0.25))   # (C, 1)
    sig2 = sig * sig + 1e-6                                # (C, 1)
    t2 = t * t                                             # (1, L)
    term2 = 1.0 - t2 / sig2                                # (C, L)
    term3 = jnp.exp(-t2 / (2.0 * sig2))                    # (C, L)
    w = term1 * term2 * term3                              # (C, L) f32

    ffwd = ffwd_ref[...]                                   # (L, 2L) bf16

    # --- fused real/imag forward DFT of the wavelet (tiny: C rows) -----------
    wf = jnp.dot(w.astype(jnp.bfloat16), ffwd,
                 preferred_element_type=jnp.float32)       # (C, 2L) f32
    wr = wf[:, :L]                                         # (C, L)
    wi = wf[:, L:]                                         # (C, L)

    # --- in-kernel 'b l c' -> 'b c l' transpose (XLU), then lane-dense matmul -
    x_bcl = jnp.transpose(x_ref[...], (0, 2, 1))           # (NB, C, L) f32
    x2 = x_bcl.reshape(NB * C, L).astype(jnp.bfloat16)     # (NB*C, L) bf16
    xf = jnp.dot(x2, ffwd, preferred_element_type=jnp.float32)   # (NB*C, 2L) f32
    xr = xf[:, :L].reshape(NB, C, L)
    xi = xf[:, L:].reshape(NB, C, L)

    # --- complex pointwise product in the frequency domain (f32, VPU) --------
    pr = xr * wr[None] - xi * wi[None]                     # (NB, C, L)
    pim = xr * wi[None] + xi * wr[None]                    # (NB, C, L)
    pr2 = pr.reshape(NB * C, L).astype(jnp.bfloat16)
    pi2 = pim.reshape(NB * C, L).astype(jnp.bfloat16)

    # --- real(IFFT(.)): two accumulated MXU matmuls, 1/L and sign folded in --
    y = (jnp.dot(pr2, invc_ref[...], preferred_element_type=jnp.float32)
         + jnp.dot(pi2, invms_ref[...], preferred_element_type=jnp.float32))   # (NB*C, L)

    # --- back to 'b l c' in-kernel (XLU) and store ----------------------------
    out_ref[...] = jnp.transpose(y.reshape(NB, C, L), (0, 2, 1)).astype(out_ref.dtype)


def _pick_nb(B, C, target_rows=256):
    """Batches per grid step: divisor of B, targets ~target_rows matmul rows per step,
    and keeps grid >= 2 when B >= 2 (v7x megacore)."""
    cap = max(1, target_rows // max(C, 1))
    if B >= 2:
        cap = min(cap, B // 2)
    nb = 1
    for d in range(1, cap + 1):
        if B % d == 0:
            nb = d
    return nb


def ricker_wavelet_filter(x, sigma):
    """x: (B, L, C) float32 in 'b l c' layout; sigma: (C,) raw learnable parameter."""
    B, L, C = x.shape
    dtype = jnp.float32
    NB = _pick_nb(B, C)
    grid = (B // NB,)

    x = x.astype(dtype)
    sig_col = sigma.reshape(C, 1).astype(dtype)

    # DFT / IDFT tables depend only on L -> trace-time numpy constants (bf16 for the MXU).
    idx = np.arange(L)
    ang = 2.0 * np.pi * np.outer(idx, idx) / L
    fr = np.cos(ang).astype(np.float32)                    # Re forward DFT (symmetric)
    fi = (-np.sin(ang)).astype(np.float32)                 # Im forward DFT
    ffwd = jnp.asarray(np.concatenate([fr, fi], axis=1)).astype(jnp.bfloat16)   # (L, 2L)
    inv_cos = jnp.asarray((np.cos(ang) / L).astype(np.float32)).astype(jnp.bfloat16)   # (L, L)
    inv_msin = jnp.asarray((-np.sin(ang) / L).astype(np.float32)).astype(jnp.bfloat16)  # (L, L)

    grid_spec = pltpu.PrefetchScalarGridSpec(
        num_scalar_prefetch=0,
        grid=grid,
        in_specs=[
            pl.BlockSpec((C, 1), lambda i: (0, 0)),              # sigma
            pl.BlockSpec((NB, L, C), lambda i: (i, 0, 0)),       # x in original 'b l c'
            pl.BlockSpec((L, 2 * L), lambda i: (0, 0)),          # fused forward DFT (bf16)
            pl.BlockSpec((L, L), lambda i: (0, 0)),              # inverse DFT cos (bf16)
            pl.BlockSpec((L, L), lambda i: (0, 0)),              # inverse DFT -sin (bf16)
        ],
        out_specs=pl.BlockSpec((NB, L, C), lambda i: (i, 0, 0)),  # output in 'b l c'
    )

    return pl.pallas_call(
        ricker_fft_conv_kernel,
        out_shape=jax.ShapeDtypeStruct((B, L, C), dtype),
        grid_spec=grid_spec,
        compiler_params=pltpu.CompilerParams(dimension_semantics=("parallel",)),
    )(sig_col, x, ffwd, inv_cos, inv_msin)


ricker_wavelet_filter = jax.jit(ricker_wavelet_filter)


def reference(x, sigma):
    """Pure-JAX mirror of the PyTorch forward (for verification)."""
    B, L, C = x.shape
    t = jnp.linspace(-1.0, 1.0, L)
    sig = jnp.exp(sigma)[:, None]                          # (C, 1)
    term1 = 2.0 / (jnp.sqrt(3.0 * sig + 1e-6) * (np.pi ** 0.25))
    term2 = 1.0 - t[None, :] ** 2 / (sig ** 2 + 1e-6)
    term3 = jnp.exp(-t[None, :] ** 2 / (2.0 * (sig ** 2 + 1e-6)))
    wavelet = term1 * term2 * term3                        # (C, L)

    xc = jnp.transpose(x, (0, 2, 1))                       # b c l
    xf = jnp.fft.fft(xc, n=L)
    wf = jnp.fft.fft(wavelet, n=L)[None]
    y = jnp.real(jnp.fft.ifft(xf * wf))
    return jnp.transpose(y, (0, 2, 1))                     # b l c


if __name__ == "__main__":
    key = jax.random.PRNGKey(0)
    B, L, C = 4, 128, 8          # batch, sequence length, channels (= args.scale)
    ricker_sigma_mean = 0.5      # args.Ricker_sigma

    k1, k2 = jax.random.split(key)
    x = jax.random.normal(k1, (B, L, C), dtype=jnp.float32)
    # nn.init.normal_(sigma, mean=args.Ricker_sigma, std=1.0)
    sigma = ricker_sigma_mean + jax.random.normal(k2, (C,), dtype=jnp.float32)

    out = jax.block_until_ready(ricker_wavelet_filter(x, sigma))

    ref = reference(x, sigma)
    rel_err = float(jnp.max(jnp.abs(out - ref)) / (jnp.max(jnp.abs(ref)) + 1e-6))
    assert out.shape == (B, L, C), out.shape
    assert rel_err < 2e-2, f"mismatch vs reference: rel_err={rel_err}"
    print("KERNEL_OK")
</pallas_src>

<mosaic_0001>
module attributes {stable_mosaic.version = 11 : i64} {
  func.func @ricker_fft_conv_kernel(%arg0: i32, %arg1: memref<8x1xf32, #tpu.memory_space<vmem>>, %arg2: memref<2x128x8xf32, #tpu.memory_space<vmem>>, %arg3: memref<128x256xbf16, #tpu.memory_space<vmem>>, %arg4: memref<128x128xbf16, #tpu.memory_space<vmem>>, %arg5: memref<128x128xbf16, #tpu.memory_space<vmem>>, %arg6: memref<2x128x8xf32, #tpu.memory_space<vmem>>) attributes {dimension_semantics = [#tpu.dimension_semantics<parallel>], iteration_bounds = array<i64: 2>, scalar_prefetch = 0 : i64, scratch_operands = 0 : i64, tpu.core_type = #tpu.core_type<tc>, window_params = [{pipeline_mode = #tpu.pipeline_mode<synchronous>, transform_indices = @transform_0, window_bounds = array<i64: 8, 1>}, {transform_indices = @transform_1, window_bounds = array<i64: 2, 128, 8>}, {pipeline_mode = #tpu.pipeline_mode<synchronous>, transform_indices = @transform_2, window_bounds = array<i64: 128, 256>}, {pipeline_mode = #tpu.pipeline_mode<synchronous>, transform_indices = @transform_3, window_bounds = array<i64: 128, 128>}, {pipeline_mode = #tpu.pipeline_mode<synchronous>, transform_indices = @transform_4, window_bounds = array<i64: 128, 128>}, {transform_indices = @transform_5, window_bounds = array<i64: 2, 128, 8>}]} {
    %0 = tpu.iota {dimensions = array<i32: 1>} : vector<1x128xi32>
    %1 = arith.sitofp %0 : vector<1x128xi32> to vector<1x128xf32>
    %cst = arith.constant 0.0157480314 : f32
    %2 = vector.broadcast %cst : f32 to vector<1x128xf32>
    %3 = arith.mulf %2, %1 : vector<1x128xf32>
    %cst_0 = arith.constant -1.000000e+00 : f32
    %4 = vector.broadcast %cst_0 : f32 to vector<1x128xf32>
    %5 = arith.addf %4, %3 : vector<1x128xf32>
    %c0 = arith.constant 0 : index
    %c0_1 = arith.constant 0 : index
    %6 = vector.load %arg1[%c0, %c0_1] : memref<8x1xf32, #tpu.memory_space<vmem>>, vector<8x1xf32>
    %7 = math.exp %6 : vector<8x1xf32>
    %cst_2 = arith.constant 3.000000e+00 : f32
    %8 = vector.broadcast %cst_2 : f32 to vector<8x1xf32>
    %9 = arith.mulf %8, %7 : vector<8x1xf32>
    %cst_3 = arith.constant 9.99999997E-7 : f32
    %10 = vector.broadcast %cst_3 : f32 to vector<8x1xf32>
    %11 = arith.addf %9, %10 : vector<8x1xf32>
    %12 = math.sqrt %11 : vector<8x1xf32>
    %cst_4 = arith.constant 1.33133531 : f32
    %13 = vector.broadcast %cst_4 : f32 to vector<8x1xf32>
    %14 = arith.mulf %12, %13 : vector<8x1xf32>
    %cst_5 = arith.constant 2.000000e+00 : f32
    %15 = vector.broadcast %cst_5 : f32 to vector<8x1xf32>
    %16 = arith.divf %15, %14 : vector<8x1xf32>
    %17 = arith.mulf %7, %7 : vector<8x1xf32>
    %cst_6 = arith.constant 9.99999997E-7 : f32
    %18 = vector.broadcast %cst_6 : f32 to vector<8x1xf32>
    %19 = arith.addf %17, %18 : vector<8x1xf32>
    %20 = arith.mulf %5, %5 : vector<1x128xf32>
    %21 = vector.broadcast %20 : vector<1x128xf32> to vector<8x128xf32>
    %22 = vector.broadcast %19 : vector<8x1xf32> to vector<8x128xf32>
    %23 = arith.divf %21, %22 : vector<8x128xf32>
    %cst_7 = arith.constant 1.000000e+00 : f32
    %24 = vector.broadcast %cst_7 : f32 to vector<8x128xf32>
    %25 = arith.subf %24, %23 : vector<8x128xf32>
    %cst_8 = arith.constant 0.000000e+00 : f32
    %26 = vector.broadcast %cst_8 : f32 to vector<1x128xf32>
    %27 = arith.subf %26, %20 : vector<1x128xf32>
    %cst_9 = arith.constant 2.000000e+00 : f32
    %28 = vector.broadcast %cst_9 : f32 to vector<8x1xf32>
    %29 = arith.mulf %28, %19 : vector<8x1xf32>
    %30 = vector.broadcast %27 : vector<1x128xf32> to vector<8x128xf32>
    %31 = vector.broadcast %29 : vector<8x1xf32> to vector<8x128xf32>
    %32 = arith.divf %30, %31 : vector<8x128xf32>
    %33 = math.exp %32 : vector<8x128xf32>
    %34 = vector.broadcast %16 : vector<8x1xf32> to vector<8x128xf32>
    %35 = arith.mulf %34, %25 : vector<8x128xf32>
    %36 = arith.mulf %35, %33 : vector<8x128xf32>
    %c0_10 = arith.constant 0 : index
    %c0_11 = arith.constant 0 : index
    %37 = vector.load %arg3[%c0_10, %c0_11] : memref<128x256xbf16, #tpu.memory_space<vmem>>, vector<128x256xbf16>
    %38 = arith.truncf %36 : vector<8x128xf32> to vector<8x128xbf16>
    %cst_12 = arith.constant dense<0.000000e+00> : vector<8x256xf32>
    %39 = tpu.matmul %38, %37, %cst_12 {dimension_numbers = #tpu.dot_dimension_numbers<[1], [0], [0], [1], [0, 0, 1, 1], [], []>} : vector<8x128xbf16>, vector<128x256xbf16>, vector<8x256xf32> -> vector<8x256xf32>
    %40 = vector.extract_strided_slice %39 {offsets = [0, 0], sizes = [8, 128], strides = [1, 1]} : vector<8x256xf32> to vector<8x128xf32>
    %41 = vector.extract_strided_slice %39 {offsets = [0, 128], sizes = [8, 128], strides = [1, 1]} : vector<8x256xf32> to vector<8x128xf32>
    %c0_13 = arith.constant 0 : index
    %c0_14 = arith.constant 0 : index
    %c0_15 = arith.constant 0 : index
    %42 = vector.load %arg2[%c0_13, %c0_14, %c0_15] : memref<2x128x8xf32, #tpu.memory_space<vmem>>, vector<2x128x8xf32>
    %43 = tpu.transpose %42, [0, 2, 1] : vector<2x128x8xf32> -> vector<2x8x128xf32>
    %44 = vector.shape_cast %43 : vector<2x8x128xf32> to vector<16x128xf32>
    %45 = arith.truncf %44 : vector<16x128xf32> to vector<16x128xbf16>
    %cst_16 = arith.constant dense<0.000000e+00> : vector<16x256xf32>
    %46 = tpu.matmul %45, %37, %cst_16 {dimension_numbers = #tpu.dot_dimension_numbers<[1], [0], [0], [1], [0, 0, 1, 1], [], []>} : vector<16x128xbf16>, vector<128x256xbf16>, vector<16x256xf32> -> vector<16x256xf32>
    %47 = vector.extract_strided_slice %46 {offsets = [0, 0], sizes = [16, 128], strides = [1, 1]} : vector<16x256xf32> to vector<16x128xf32>
    %48 = vector.shape_cast %47 : vector<16x128xf32> to vector<2x8x128xf32>
    %49 = vector.extract_strided_slice %46 {offsets = [0, 128], sizes = [16, 128], strides = [1, 1]} : vector<16x256xf32> to vector<16x128xf32>
    %50 = vector.shape_cast %49 : vector<16x128xf32> to vector<2x8x128xf32>
    %51 = vector.shape_cast %40 : vector<8x128xf32> to vector<1x8x128xf32>
    %52 = vector.broadcast %51 : vector<1x8x128xf32> to vector<2x8x128xf32>
    %53 = arith.mulf %48, %52 : vector<2x8x128xf32>
    %54 = vector.shape_cast %41 : vector<8x128xf32> to vector<1x8x128xf32>
    %55 = vector.broadcast %54 : vector<1x8x128xf32> to vector<2x8x128xf32>
    %56 = arith.mulf %50, %55 : vector<2x8x128xf32>
    %57 = arith.subf %53, %56 : vector<2x8x128xf32>
    %58 = vector.shape_cast %41 : vector<8x128xf32> to vector<1x8x128xf32>
    %59 = vector.broadcast %58 : vector<1x8x128xf32> to vector<2x8x128xf32>
    %60 = arith.mulf %48, %59 : vector<2x8x128xf32>
    %61 = vector.shape_cast %40 : vector<8x128xf32> to vector<1x8x128xf32>
    %62 = vector.broadcast %61 : vector<1x8x128xf32> to vector<2x8x128xf32>
    %63 = arith.mulf %50, %62 : vector<2x8x128xf32>
    %64 = arith.addf %60, %63 : vector<2x8x128xf32>
    %65 = vector.shape_cast %57 : vector<2x8x128xf32> to vector<16x128xf32>
    %66 = arith.truncf %65 : vector<16x128xf32> to vector<16x128xbf16>
    %67 = vector.shape_cast %64 : vector<2x8x128xf32> to vector<16x128xf32>
    %68 = arith.truncf %67 : vector<16x128xf32> to vector<16x128xbf16>
    %c0_17 = arith.constant 0 : index
    %c0_18 = arith.constant 0 : index
    %69 = vector.load %arg4[%c0_17, %c0_18] : memref<128x128xbf16, #tpu.memory_space<vmem>>, vector<128x128xbf16>
    %cst_19 = arith.constant dense<0.000000e+00> : vector<16x128xf32>
    %70 = tpu.matmul %66, %69, %cst_19 {dimension_numbers = #tpu.dot_dimension_numbers<[1], [0], [0], [1], [0, 0, 1, 1], [], []>} : vector<16x128xbf16>, vector<128x128xbf16>, vector<16x128xf32> -> vector<16x128xf32>
    %c0_20 = arith.constant 0 : index
    %c0_21 = arith.constant 0 : index
    %71 = vector.load %arg5[%c0_20, %c0_21] : memref<128x128xbf16, #tpu.memory_space<vmem>>, vector<128x128xbf16>
    %cst_22 = arith.constant dense<0.000000e+00> : vector<16x128xf32>
    %72 = tpu.matmul %68, %71, %cst_22 {dimension_numbers = #tpu.dot_dimension_numbers<[1], [0], [0], [1], [0, 0, 1, 1], [], []>} : vector<16x128xbf16>, vector<128x128xbf16>, vector<16x128xf32> -> vector<16x128xf32>
    %73 = arith.addf %70, %72 : vector<16x128xf32>
    %74 = vector.shape_cast %73 : vector<16x128xf32> to vector<2x8x128xf32>
    %75 = tpu.transpose %74, [0, 2, 1] : vector<2x8x128xf32> -> vector<2x128x8xf32>
    %c0_23 = arith.constant 0 : index
    %c0_24 = arith.constant 0 : index
    %c0_25 = arith.constant 0 : index
    %76 = vector.load %arg6[%c0_23, %c0_24, %c0_25] : memref<2x128x8xf32, #tpu.memory_space<vmem>>, vector<2x128x8xf32>
    tpu.vector_store %arg6[%c0_23, %c0_24, %c0_25], %75 {strides = array<i32>} : memref<2x128x8xf32, #tpu.memory_space<vmem>>, vector<2x128x8xf32>,
    return
  }
  func.func @transform_0(%arg0: i32) -> (i32, i32) {
    %c0_i32 = arith.constant 0 : i32
    %c0_i32_0 = arith.constant 0 : i32
    %c0_i32_1 = arith.constant 0 : i32
    return %c0_i32, %c0_i32_0 : i32, i32
  }
  func.func @transform_1(%arg0: i32) -> (i32, i32, i32) {
    %c0_i32 = arith.constant 0 : i32
    %c0_i32_0 = arith.constant 0 : i32
    %c0_i32_1 = arith.constant 0 : i32
    return %arg0, %c0_i32, %c0_i32_0 : i32, i32, i32
  }
  func.func @transform_2(%arg0: i32) -> (i32, i32) {
    %c0_i32 = arith.constant 0 : i32
    %c0_i32_0 = arith.constant 0 : i32
    %c0_i32_1 = arith.constant 0 : i32
    return %c0_i32, %c0_i32_0 : i32, i32
  }
  func.func @transform_3(%arg0: i32) -> (i32, i32) {
    %c0_i32 = arith.constant 0 : i32
    %c0_i32_0 = arith.constant 0 : i32
    %c0_i32_1 = arith.constant 0 : i32
    return %c0_i32, %c0_i32_0 : i32, i32
  }
  func.func @transform_4(%arg0: i32) -> (i32, i32) {
    %c0_i32 = arith.constant 0 : i32
    %c0_i32_0 = arith.constant 0 : i32
    %c0_i32_1 = arith.constant 0 : i32
    return %c0_i32, %c0_i32_0 : i32, i32
  }
  func.func @transform_5(%arg0: i32) -> (i32, i32, i32) {
    %c0_i32 = arith.constant 0 : i32
    %c0_i32_0 = arith.constant 0 : i32
    %c0_i32_1 = arith.constant 0 : i32
    return %arg0, %c0_i32, %c0_i32_0 : i32, i32, i32
  }
}

</mosaic_0001>

<bundles_post_ra>
// kernel: ricker_wavelet_filter.1
= control target key start
LH: loop header
LB: loop body
LE: loop exit
PB: predicated region body
PF: predicated region fallthrough
CT: control target
= control target key end

     0   :  { %s1192_s18 = smov 0   ;;  %s1501_s0 = inlined_call_operand.vmem [shape: f32[8,1], index: 0, kind: input, shape index: {}]   ;;  %s1502_s1 = inlined_call_operand.vmem [shape: f32[4,128,8], index: 1, kind: input, shape index: {}]   ;;  %s1503_s2 = inlined_call_operand.vmem [shape: bf16[128,256], index: 2, kind: input, shape index: {}]   ;;  %s1504_s3 = inlined_call_operand.vmem [shape: bf16[128,128], index: 3, kind: input, shape index: {}]   ;;  %s1505_s4 = inlined_call_operand.vmem [shape: bf16[128,128], index: 4, kind: input, shape index: {}]   ;;  %s1506_s5 = inlined_call_operand.vmem [shape: f32[4,128,8], index: 5, kind: output, shape index: {}]  }
   0x1 LB: > { %s940_s19 = sadd.s32 4294967295, %s1157_s18   ;;  %p944_p0 = scmp.ge.s32.totalorder %s1157_s18, 1  ;;  %s1157_s18 = sphi %s1192_s18, %s15_s18  }
   0x2   : > { %p189_p1 = scmp.lt.s32.totalorder %s1157_s18, 3 }
   0x4   : > { %p190_p2 = pnand %p944_p0, %p189_p1 }
   0x5   : > { %v239_v0 = vld [vmem:[%s1501_s0] sm:$0xff] (!%p190_p2)  ;;  %v1159_v1 = vmov (!%p190_p2), 0   ;;  %v1217_v11 = vld [vmem:[%s1503_s2 + $0x14] ss:$8 sps:$4 sm:$0xff] (!%p190_p2)   ;;  %v1223_v12 = vld [vmem:[%s1503_s2 + $0x10] ss:$8 sps:$4 sm:$0xff] (!%p190_p2)  }
   0x6   : > { %193 = sbr.rel (%p190_p2) target bundleno = 946 (0x3b2), region = 40  ;;  %1060 = vset.pattern.permute.xlu0 (!%p190_p2), %v1159_v1  ;;  %v240_v2 = vmul.f32 (!%p190_p2), 1.442695, %v239_v0  ;;  %1061 = vset.pattern.permute.xlu1 (!%p190_p2), %v1159_v1  ;;  %v1099_v9 = vld [vmem:[%s1503_s2 + $0x4] ss:$8 sps:$4 sm:$0xff] (!%p190_p2)   ;;  %s945_s6 = sshll.u32 (!%p190_p2), %s940_s19, 1 }
   0x7   : > { %412 = vmatprep.mubr.bf16.mxu1 (!%p190_p2), %v1159_v1  ;;  %v1212_v10 = vld [vmem:[%s1503_s2] ss:$8 sps:$4 sm:$0xff] (!%p190_p2)   ;;  %380 = vmatprep.subr.bf16.mxu1 (!%p190_p2), %v1099_v9  ;;  %v1229_v13 = vld [vmem:[%s1503_s2 + $0x24] ss:$8 sps:$4 sm:$0xff] (!%p190_p2)   ;;  %v1240_v16 = vld [vmem:[%s1503_s2 + $0x34] ss:$8 sps:$4 sm:$0xff] (!%p190_p2)  }
   0x8   : > { %1139 = vpow2.f32 (!%p190_p2), %v240_v2  ;;  %381 = vmatpush1.bf16.msra.mxu1 (!%p190_p2), %v1212_v10  ;;  %v1234_v15 = vld [vmem:[%s1503_s2 + $0x20] ss:$8 sps:$4 sm:$0xff] (!%p190_p2)   ;;  %v1246_v19 = vld [vmem:[%s1503_s2 + $0x30] ss:$8 sps:$4 sm:$0xff] (!%p190_p2)   ;;  %v1251_v20 = vld [vmem:[%s1503_s2 + $0x44] ss:$8 sps:$4 sm:$0xff] (!%p190_p2)  }
   0x9   : > { %382 = vmatprep.subr.bf16.mxu1 (!%p190_p2), %v1217_v11  ;;  %v1259_v24 = vld [vmem:[%s1503_s2 + $0x40] ss:$8 sps:$4 sm:$0xff] (!%p190_p2)   ;;  %v1265_v25 = vld [vmem:[%s1503_s2 + $0x54] ss:$8 sps:$4 sm:$0xff] (!%p190_p2)   ;;  %v1271_v26 = vld [vmem:[%s1503_s2 + $0x50] ss:$8 sps:$4 sm:$0xff] (!%p190_p2)  }
   0xa   : > { %v1277_v27 = vld [vmem:[%s1503_s2 + $0x64] ss:$8 sps:$4 sm:$0xff] (!%p190_p2)   ;;  %v1283_v28 = vld [vmem:[%s1503_s2 + $0x60] ss:$8 sps:$4 sm:$0xff] (!%p190_p2)   ;;  %v1290_v31 = vld [vmem:[%s1503_s2 + $0x74] ss:$8 sps:$4 sm:$0xff] (!%p190_p2)  }
   0xb   : > { %v1295_v32 = vld [vmem:[%s1503_s2 + $0x70] ss:$8 sps:$4 sm:$0xff] (!%p190_p2)   ;;  %p220_p3 = scmp.lt.s32.totalorder (!%p190_p2), %s945_s6, 3  ;;  %vm1161_vm2 = vmmov (!%p190_p2), 0   ;;  %vm849_vm3 = vcmask (!%p190_p2), 64512  }
   0xc   : > { %383 = vmatpush1.bf16.msra.mxu1 (!%p190_p2), %v1223_v12 }
   0xd   : > { %384 = vmatprep.subr.bf16.mxu1 %v1229_v13  ;;  %s1508_s6 = smov (!%p220_p3, %s945_s6), 3 }
   0xe   : > { %s985_s7 = sshll.u32 %s1508_s6, 7 }
   0xf   : > { %s1309_s10 = scalar_lea.vmem %s1502_s1, %s985_s7  ;;  %s1432_s24 = scalar_lea.vmem %s1506_s5, %s985_s7 }
  0x10   : > { %385 = vmatpush1.bf16.msra.mxu1 %v1234_v15  ;;  %v421_v33 = vld [vmem:[%s1309_s10] sm:$0xff]  ;;  %v422_v36 = vld [vmem:[%s1309_s10 + $0x8] sm:$0xff]  ;;  %v423_v39 = vld [vmem:[%s1309_s10 + $0x10] sm:$0xff] }
  0x11   : > { %386 = vmatprep.subr.bf16.mxu1 %v1240_v16  ;;  %v437_v34 = vld [vmem:[%s1309_s10 + $0x80] sm:$0xff]  ;;  %v438_v37 = vld [vmem:[%s1309_s10 + $0x88] sm:$0xff]  ;;  %v439_v40 = vld [vmem:[%s1309_s10 + $0x90] sm:$0xff] }
  0x12   : > { %v1140_v3 = vpop.eup %1139  ;;  %v1062_v35 = vpack.i.bf16 %v437_v34, %v421_v33  ;;  %v1064_v38 = vpack.i.bf16 %v438_v37, %v422_v36  ;;  %v1066_v41 = vpack.i.bf16 %v439_v40, %v423_v39  ;;  %v424_v42 = vld [vmem:[%s1309_s10 + $0x18] sm:$0xff]  ;;  %v425_v45 = vld [vmem:[%s1309_s10 + $0x20] sm:$0xff]  ;;  %v426_v48 = vld [vmem:[%s1309_s10 + $0x28] sm:$0xff] }
  0x13   : > { %v254_v4 = vmul.f32 %v1140_v3, %v1140_v3  ;;  %v242_v5 = vmul.f32 3.0, %v1140_v3  ;;  %v440_v43 = vld [vmem:[%s1309_s10 + $0x98] sm:$0xff]  ;;  %v441_v46 = vld [vmem:[%s1309_s10 + $0xa0] sm:$0xff]  ;;  %v442_v49 = vld [vmem:[%s1309_s10 + $0xa8] sm:$0xff] }
  0x14   : > { %387 = vmatpush1.bf16.msra.mxu1 %v1246_v19  ;;  %v1068_v44 = vpack.i.bf16 %v440_v43, %v424_v42  ;;  %v1070_v47 = vpack.i.bf16 %v441_v46, %v425_v45  ;;  %v1072_v50 = vpack.i.bf16 %v442_v49, %v426_v48  ;;  %v427_v51 = vld [vmem:[%s1309_s10 + $0x30] sm:$0xff]  ;;  %v428_v54 = vld [vmem:[%s1309_s10 + $0x38] sm:$0xff]  ;;  %v429_v57 = vld [vmem:[%s1309_s10 + $0x40] sm:$0xff] }
  0x15   : > { %v255_v6 = vadd.f32 1e-06, %v254_v4  ;;  %v243_v7 = vadd.f32 1e-06, %v242_v5  ;;  %388 = vmatprep.subr.bf16.mxu1 %v1251_v20  ;;  %v443_v52 = vld [vmem:[%s1309_s10 + $0xb0] sm:$0xff]  ;;  %v444_v55 = vld [vmem:[%s1309_s10 + $0xb8] sm:$0xff] }
  0x16   : > { %v1074_v53 = vpack.i.bf16 %v443_v52, %v427_v51  ;;  %v1076_v56 = vpack.i.bf16 %v444_v55, %v428_v54  ;;  %v445_v58 = vld [vmem:[%s1309_s10 + $0xc0] sm:$0xff]  ;;  %v430_v60 = vld [vmem:[%s1309_s10 + $0x48] sm:$0xff]  ;;  %v431_v63 = vld [vmem:[%s1309_s10 + $0x50] sm:$0xff] }
  0x17   : > { %v266_v8 = vmul.f32 2.0, %v255_v6  ;;  %1141 = vrsqrt.f32 %v243_v7  ;;  %vm246_vm0 = vcmp.eq.f32.partialorder %v243_v7, inf  ;;  %vm248_vm1 = vcmp.eq.f32.partialorder %v243_v7, 0.0  ;;  %v446_v61 = vld [vmem:[%s1309_s10 + $0xc8] sm:$0xff]  ;;  %v447_v0 = vld [vmem:[%s1309_s10 + $0xd0] sm:$0xff]  ;;  %v432_v3 = vld [vmem:[%s1309_s10 + $0x58] sm:$0xff] }
  0x18   : > { %v249_v14 = vand.u32 2147483648, %v243_v7  ;;  %389 = vmatpush1.bf16.msra.mxu1 %v1259_v24  ;;  %v1078_v59 = vpack.i.bf16 %v445_v58, %v429_v57  ;;  %v1080_v62 = vpack.i.bf16 %v446_v61, %v430_v60  ;;  %v1082_v2 = vpack.i.bf16 %v447_v0, %v431_v63  ;;  %v448_v4 = vld [vmem:[%s1309_s10 + $0xd8] sm:$0xff] }
  0x19   : > { %269 = vperm.xlu0 %1060, %v266_v8   ;;  %390 = vmatprep.subr.bf16.mxu1 %v1265_v25  ;;  %v1084_v5 = vpack.i.bf16 %v448_v4, %v432_v3  ;;  %v234_v8 = vlaneseq  ;;  %v436_v33 = vld [vmem:[%s1309_s10 + $0x78] sm:$0xff] }
  0x1a   : > { %v452_v34 = vld [vmem:[%s1309_s10 + $0xf8] sm:$0xff] }
  0x1b   : > { %v1092_v36 = vpack.i.bf16 %v452_v34, %v436_v33 }
  0x1c   : > { %391 = vmatpush1.bf16.msra.mxu1 %v1271_v26 }
  0x1d   : > { %259 = vperm.xlu0 %1060, %v255_v6   ;;  %392 = vmatprep.subr.bf16.mxu1 %v1277_v27  ;;  %v433_v6 = vld [vmem:[%s1309_s10 + $0x60] sm:$0xff] }
  0x20   : > { %393 = vmatpush1.bf16.msra.mxu1 %v1283_v28 }
  0x21   : > { %v1142_v17 = vpop.eup %1141  ;;  %394 = vmatprep.subr.bf16.mxu1 %v1290_v31 }
  0x22   : > { %v245_v18 = vmul.f32 %v1142_v17, %v243_v7  ;;  %v450_v17 = vld [vmem:[%s1309_s10 + $0xe8] sm:$0xff] }
  0x24   : > { %v247_v21 = vsel %vm246_vm0, %v243_v7, %v245_v18  ;;  %395 = vmatpush1.bf16.msra.mxu1 %v1295_v32  ;;  %v449_v7 = vld [vmem:[%s1309_s10 + $0xe0] sm:$0xff]  ;;  %v235_v18 = vand.u32 127, %v234_v8 }
  0x25   : > { %v250_v22 = vsel %vm248_vm1, %v249_v14, %v247_v21  ;;  %518 = vmatprep.subr.bf16.mxu1 %v1099_v9  ;;  %v1086_v9 = vpack.i.bf16 %v449_v7, %v433_v6  ;;  %v434_v14 = vld [vmem:[%s1309_s10 + $0x68] sm:$0xff]  ;;  %v1131_v7 = vld [vmem:[%s1504_s3] sm:$0xff]  }
  0x26   : > { %v251_v23 = vmul.f32 1.3313353, %v250_v22  ;;  %v1088_v21 = vpack.i.bf16 %v450_v17, %v434_v14  ;;  %v435_v22 = vld [vmem:[%s1309_s10 + $0x70] sm:$0xff]  ;;  %v1132_v14 = vld [vmem:[%s1504_s3 + $0x8] sm:$0xff]  }
  0x27   : > { %v1133_v17 = vld [vmem:[%s1504_s3 + $0x10] sm:$0xff]  }
  0x28   : > { %1143 = vrcp.f32 %v251_v23  ;;  %v451_v23 = vld [vmem:[%s1309_s10 + $0xf0] sm:$0xff] }
  0x32   : > { %v1144_v29 = vpop.eup %1143 }
  0x33   : > { %v253_v30 = vmul.f32 2.0, %v1144_v29  ;;  %v236_v29 = vcvt.s32.f32 %v235_v18  ;;  %v1134_v18 = vld [vmem:[%s1504_s3 + $0x18] sm:$0xff]  }
  0x35   : > { %278 = vperm.xlu1 %1061, %v253_v30   ;;  %v1090_v30 = vpack.i.bf16 %v451_v23, %v435_v22  ;;  %v1136_v22 = vld [vmem:[%s1504_s3 + $0x28] sm:$0xff]   ;;  %v1137_v23 = vld [vmem:[%s1504_s3 + $0x30] sm:$0xff]  }
  0x5e   : > { %1063 = vxpose.xlu1.b32.start [1/16] (narrow) %v1062_v35, 8  ;;  %v237_v35 = vmul.f32 0.015748031, %v236_v29  ;;  %v1138_v29 = vld [vmem:[%s1504_s3 + $0x38] sm:$0xff]  }
  0x62   : > { %1065 = vxpose.xlu1.b32.cont [2/16] (narrow) %v1064_v38, 8  ;;  %v238_v38 = vadd.f32 -1.0, %v237_v35 }
  0x64   : > { %v256_v39 = vmul.f32 %v238_v38, %v238_v38 }
  0x66   : > { %1067 = vxpose.xlu1.b32.cont [3/16] (narrow) %v1066_v41, 8  ;;  %v265_v41 = vsub.f32 0.0, %v256_v39 }
  0x6a   : > { %1069 = vxpose.xlu1.b32.cont [4/16] (narrow) %v1068_v44, 8 }
  0x6e   : > { %1071 = vxpose.xlu1.b32.cont [5/16] (narrow) %v1070_v47, 8 }
  0x72   : > { %1073 = vxpose.xlu1.b32.cont [6/16] (narrow) %v1072_v50, 8 }
  0x76   : > { %1075 = vxpose.xlu1.b32.cont [7/16] (narrow) %v1074_v53, 8 }
  0x7a   : > { %1077 = vxpose.xlu1.b32.cont [8/16] (narrow) %v1076_v56, 8 }
  0x7e   : > { %1079 = vxpose.xlu1.b32.cont [9/16] (narrow) %v1078_v59, 8 }
  0x82   : > { %1081 = vxpose.xlu1.b32.cont [10/16] (narrow) %v1080_v62, 8 }
  0x86   : > { %1083 = vxpose.xlu1.b32.cont [11/16] (narrow) %v1082_v2, 8 }
  0x8a   : > { %1085 = vxpose.xlu1.b32.cont [12/16] (narrow) %v1084_v5, 8 }
  0x8e   : > { %1087 = vxpose.xlu1.b32.cont [13/16] (narrow) %v1086_v9, 8 }
  0x92   : > { %1089 = vxpose.xlu1.b32.cont [14/16] (narrow) %v1088_v21, 8  ;;  %v1135_v21 = vld [vmem:[%s1504_s3 + $0x20] sm:$0xff]  }
  0x96   : > { %1091 = vxpose.xlu1.b32.cont [15/16] (narrow) %v1090_v30, 8 }
  0x98   : > { %v270_v37 = vpop.permute.xlu0 %269 }
  0x99   : > { %1145 = vrcp.f32 %v270_v37 }
  0x9a   : > { %1093 = vxpose.xlu1.b32.end [16/16] (narrow) %v1092_v36, 8 }
  0x9c   : > { %v260_v40 = vpop.permute.xlu0 %259 }
  0x9d   : > { %1147 = vrcp.f32 %v260_v40 }
  0xa3   : > { %v1146_v42 = vpop.eup %1145 }
  0xa4   : > { %v273_v43 = vmul.f32 %v1146_v42, %v265_v41 }
  0xa6   : > { %v274_v44 = vmul.f32 1.442695, %v273_v43 }
  0xa7   : > { %v1148_v45 = vpop.eup %1147 }
  0xa8   : > { %1149 = vpow2.f32 %v274_v44  ;;  %v263_v46 = vmul.f32 %v1148_v45, %v256_v39 }
  0xaa   : > { %v264_v47 = vsub.f32 1.0, %v263_v46 }
  0xb2   : > { %v1150_v48 = vpop.eup %1149 }
  0xb4   : > { %v279_v49 = vpop.permute.xlu1 %278 }
  0xb5   : > { %v281_v50 = vmul.f32 %v279_v49, %v264_v47 }
  0xb7   : > { %v282_v51 = vmul.f32 %v1150_v48, %v281_v50 }
  0xb9   : > { %v299_v52 = vpack.c.bf16 %v282_v51, %v282_v51 }
  0xbb   : > { %413 = vmatmul.mubr.bf16.vlgmr.msra.gmra.mrb[0].mxu1 %v299_v52 }
  0xbc   : > { %519 = vmatpush1.bf16.msra.mxu1 %v1212_v10  ;;  %550 = vmatprep.mubr.bf16.mxu1 %v1159_v1 }
  0xbd   : > { %520 = vmatprep.subr.bf16.mxu1 %v1217_v11 }
  0xc0   : > { %521 = vmatpush1.bf16.msra.mxu1 %v1223_v12 }
  0xc1   : > { %522 = vmatprep.subr.bf16.mxu1 %v1229_v13  ;;  %v1123_v13 = vld [vmem:[%s1505_s4] sm:$0xff]  }
  0xc4   : > { %523 = vmatpush1.bf16.msra.mxu1 %v1234_v15  ;;  %v1160_v15 = vmov 0.0  }
  0xc5   : > { %524 = vmatprep.subr.bf16.mxu1 %v1240_v16  ;;  %1005 = vmatprep.subr.bf16.mxu0 %v1160_v15  ;;  %v1124_v16 = vld [vmem:[%s1505_s4 + $0x8] sm:$0xff]  }
  0xc6   : > { %1006 = vmatpush3.bf16.msra.mxu0 %v1123_v13  ;;  %1021 = vmatprep.mubr.msk.bf16.mxu0 %vm1161_vm2, %v1160_v15 }
  0xc7   : > { %1007 = vmatprep.subr.bf16.mxu0 %v1160_v15 }
  0xc8   : > { %525 = vmatpush1.bf16.msra.mxu1 %v1246_v19  ;;  %v1125_v19 = vld [vmem:[%s1505_s4 + $0x10] sm:$0xff]  }
  0xc9   : > { %526 = vmatprep.subr.bf16.mxu1 %v1251_v20  ;;  %v1126_v20 = vld [vmem:[%s1505_s4 + $0x18] sm:$0xff]  }
  0xca   : > { %1008 = vmatpush3.bf16.msra.mxu0 %v1124_v16 }
  0xcb   : > { %1009 = vmatprep.subr.bf16.mxu0 %v1160_v15 }
  0xcc   : > { %527 = vmatpush1.bf16.msra.mxu1 %v1259_v24  ;;  %v1127_v24 = vld [vmem:[%s1505_s4 + $0x20] sm:$0xff]  }
  0xcd   : > { %528 = vmatprep.subr.bf16.mxu1 %v1265_v25  ;;  %v1128_v25 = vld [vmem:[%s1505_s4 + $0x28] sm:$0xff]  }
  0xce   : > { %1010 = vmatpush3.bf16.msra.mxu0 %v1125_v19 }
  0xcf   : > { %1011 = vmatprep.subr.bf16.mxu0 %v1160_v15 }
  0xd0   : > { %529 = vmatpush1.bf16.msra.mxu1 %v1271_v26  ;;  %v1129_v26 = vld [vmem:[%s1505_s4 + $0x30] sm:$0xff]  }
  0xd1   : > { %530 = vmatprep.subr.bf16.mxu1 %v1277_v27  ;;  %v1130_v27 = vld [vmem:[%s1505_s4 + $0x38] sm:$0xff]  }
  0xd2   : > { %1012 = vmatpush3.bf16.msra.mxu0 %v1126_v20 }
  0xd3   : > { %1013 = vmatprep.subr.bf16.mxu0 %v1160_v15 }
  0xd4   : > { %531 = vmatpush1.bf16.msra.mxu1 %v1283_v28 }
  0xd5   : > { %532 = vmatprep.subr.bf16.mxu1 %v1290_v31 }
  0xd6   : > { %1014 = vmatpush3.bf16.msra.mxu0 %v1127_v24 }
  0xd7   : > { %1015 = vmatprep.subr.bf16.mxu0 %v1160_v15 }
  0xd8   : > { %533 = vmatpush1.bf16.msra.mxu1 %v1295_v32 }
  0xda   : > { %1016 = vmatpush3.bf16.msra.mxu0 %v1128_v25 }
  0xdb   : > { %1017 = vmatprep.subr.bf16.mxu0 %v1160_v15 }
  0xde   : > { %v1094_v1 = vpop.trf.xlu1  ;;  %1018 = vmatpush3.bf16.msra.mxu0 %v1129_v26 }
  0xdf   : > { %v1098_v10 = vunpack.i.h.bf16 %v1094_v1  ;;  %v1095_v11 = vunpack.i.l.bf16 %v1094_v1  ;;  %1019 = vmatprep.subr.bf16.mxu0 %v1160_v15 }
  0xe1   : > { %v517_v12 = vpack.c.bf16 %v1098_v10, %v1095_v11 }
  0xe2   : > { %1020 = vmatpush3.bf16.msra.mxu0 %v1130_v27 }
  0xe3   : > { %551 = vmatmul.mubr.bf16.vlgmr.msra.gmra.mrb[4].mxu1 %v517_v12  ;;  %1025 = vmatprep.subr.bf16.mxu0 %v1160_v15 }
 0x18e   : > { %v414_v28 = vpop.f32.mrb[0].mxu1 }
 0x18f   : > { %v416_v31 = vpop.f32.mrb[1].mxu1 }
 0x190   : > { %v418_v32 = vpop.f32.mrb[2].mxu1 }
 0x191   : > { %v419_v53 = vpop.f32.mrb[3].mxu1 }
 0x1b6   : > { %v552_v54 = vpop.f32.mrb[4].mxu1 }
 0x1b7   : > { %v561_v55 = vmul.f32 %v552_v54, %v414_v28  ;;  %v567_v56 = vmul.f32 %v552_v54, %v416_v31  ;;  %v554_v57 = vpop.f32.mrb[5].mxu1 }
 0x1b8   : > { %v563_v58 = vmul.f32 %v554_v57, %v416_v31  ;;  %v569_v59 = vmul.f32 %v554_v57, %v414_v28  ;;  %v556_v60 = vpop.f32.mrb[6].mxu1 }
 0x1b9   : > { %v562_v61 = vmul.f32 %v556_v60, %v414_v28  ;;  %v568_v62 = vmul.f32 %v556_v60, %v416_v31  ;;  %v558_v63 = vpop.f32.mrb[7].mxu1 }
 0x1ba   : > { %v565_v0 = vsub.f32 %v561_v55, %v563_v58  ;;  %v571_v2 = vadd.f32 %v569_v59, %v567_v56  ;;  %v564_v3 = vmul.f32 %v558_v63, %v416_v31  ;;  %v570_v4 = vmul.f32 %v558_v63, %v414_v28 }
 0x1bc   : > { %v566_v5 = vsub.f32 %v562_v61, %v564_v3  ;;  %v572_v6 = vadd.f32 %v570_v4, %v568_v62 }
 0x1be   : > { %v573_v8 = vpack.c.bf16 %v566_v5, %v565_v0  ;;  %v574_v9 = vpack.c.bf16 %v572_v6, %v571_v2 }
 0x1c0   : > { %1022 = vmatmul.mubr.bf16.vlgmr.msra.gmra.mrb[0].mxu0 %v574_v9 }
 0x1c1   : > { %1026 = vmatpush3.bf16.msra.mxu0 %v1131_v7  ;;  %1041 = vmatprep.mubr.msk.bf16.mxu0 %vm1161_vm2, %v1160_v15 }
 0x1c2   : > { %1027 = vmatprep.subr.bf16.mxu0 %v1160_v15 }
 0x1c5   : > { %1028 = vmatpush3.bf16.msra.mxu0 %v1132_v14 }
 0x1c6   : > { %1029 = vmatprep.subr.bf16.mxu0 %v1160_v15 }
 0x1c9   : > { %1030 = vmatpush3.bf16.msra.mxu0 %v1133_v17 }
 0x1ca   : > { %1031 = vmatprep.subr.bf16.mxu0 %v1160_v15 }
 0x1cd   : > { %1032 = vmatpush3.bf16.msra.mxu0 %v1134_v18 }
 0x1ce   : > { %1033 = vmatprep.subr.bf16.mxu0 %v1160_v15 }
 0x1d1   : > { %1034 = vmatpush3.bf16.msra.mxu0 %v1135_v21 }
 0x1d2   : > { %1035 = vmatprep.subr.bf16.mxu0 %v1160_v15 }
 0x1d5   : > { %1036 = vmatpush3.bf16.msra.mxu0 %v1136_v22 }
 0x1d6   : > { %1037 = vmatprep.subr.bf16.mxu0 %v1160_v15 }
 0x1d9   : > { %1038 = vmatpush3.bf16.msra.mxu0 %v1137_v23 }
 0x1da   : > { %1039 = vmatprep.subr.bf16.mxu0 %v1160_v15 }
 0x1dd   : > { %1040 = vmatpush3.bf16.msra.mxu0 %v1138_v29 }
 0x1e0   : > { %1042 = vmatmul.mubr.bf16.vlgmr.msra.gmra.mrb[0].mxu0 %v573_v8 }
 0x2b3   : > { %v778_v30 = vpop.f32.mrb[0].mxu0 }
 0x2b4   : > { %785 = vxpose.xlu0.b32.start.end [1/1] (short) %v778_v30, 128  ;;  %v1043_v33 = vpop.f32.mrb[1].mxu0 }
 0x2b5   : > { %v781_v34 = vpop.f32.mrb[2].mxu0 }
 0x2b6   : > { %v1044_v35 = vpop.f32.mrb[3].mxu0 }
 0x2f1   : > { %817 = vxpose.xlu0.b32.start.end [1/1] (short) %v781_v34, 128 }
 0x334   : > { %v801_v36 = vpop.trf.xlu0 }
 0x335   : > { %850 = vst.msk [vmem:[%s1432_s24] sm:$0xff] %vm849_vm3, %v801_v36 }
 0x338   : > { %v802_v37 = vpop.trf.xlu0 }
 0x339   : > { %851 = vst.msk [vmem:[%s1432_s24 + $0x8] sm:$0xff] %vm849_vm3, %v802_v37 }
 0x33c   : > { %v803_v38 = vpop.trf.xlu0 }
 0x33d   : > { %852 = vst.msk [vmem:[%s1432_s24 + $0x10] sm:$0xff] %vm849_vm3, %v803_v38 }
 0x340   : > { %v804_v39 = vpop.trf.xlu0 }
 0x341   : > { %853 = vst.msk [vmem:[%s1432_s24 + $0x18] sm:$0xff] %vm849_vm3, %v804_v39 }
 0x344   : > { %v805_v40 = vpop.trf.xlu0 }
 0x345   : > { %854 = vst.msk [vmem:[%s1432_s24 + $0x20] sm:$0xff] %vm849_vm3, %v805_v40 }
 0x348   : > { %v806_v41 = vpop.trf.xlu0 }
 0x349   : > { %855 = vst.msk [vmem:[%s1432_s24 + $0x28] sm:$0xff] %vm849_vm3, %v806_v41 }
 0x34c   : > { %v807_v42 = vpop.trf.xlu0 }
 0x34d   : > { %856 = vst.msk [vmem:[%s1432_s24 + $0x30] sm:$0xff] %vm849_vm3, %v807_v42 }
 0x350   : > { %v808_v43 = vpop.trf.xlu0 }
 0x351   : > { %857 = vst.msk [vmem:[%s1432_s24 + $0x38] sm:$0xff] %vm849_vm3, %v808_v43 }
 0x354   : > { %v809_v44 = vpop.trf.xlu0 }
 0x355   : > { %858 = vst.msk [vmem:[%s1432_s24 + $0x40] sm:$0xff] %vm849_vm3, %v809_v44 }
 0x358   : > { %v810_v45 = vpop.trf.xlu0 }
 0x359   : > { %859 = vst.msk [vmem:[%s1432_s24 + $0x48] sm:$0xff] %vm849_vm3, %v810_v45 }
 0x35c   : > { %v811_v46 = vpop.trf.xlu0 }
 0x35d   : > { %860 = vst.msk [vmem:[%s1432_s24 + $0x50] sm:$0xff] %vm849_vm3, %v811_v46 }
 0x360   : > { %v812_v47 = vpop.trf.xlu0 }
 0x361   : > { %861 = vst.msk [vmem:[%s1432_s24 + $0x58] sm:$0xff] %vm849_vm3, %v812_v47 }
 0x364   : > { %v813_v48 = vpop.trf.xlu0 }
 0x365   : > { %862 = vst.msk [vmem:[%s1432_s24 + $0x60] sm:$0xff] %vm849_vm3, %v813_v48 }
 0x368   : > { %v814_v49 = vpop.trf.xlu0 }
 0x369   : > { %863 = vst.msk [vmem:[%s1432_s24 + $0x68] sm:$0xff] %vm849_vm3, %v814_v49 }
 0x36c   : > { %v815_v50 = vpop.trf.xlu0 }
 0x36d   : > { %864 = vst.msk [vmem:[%s1432_s24 + $0x70] sm:$0xff] %vm849_vm3, %v815_v50 }
 0x370   : > { %v816_v51 = vpop.trf.xlu0 }
 0x371   : > { %865 = vst.msk [vmem:[%s1432_s24 + $0x78] sm:$0xff] %vm849_vm3, %v816_v51 }
 0x374   : > { %v833_v52 = vpop.trf.xlu0 }
 0x375   : > { %866 = vst.msk [vmem:[%s1432_s24 + $0x80] sm:$0xff] %vm849_vm3, %v833_v52 }
 0x378   : > { %v834_v1 = vpop.trf.xlu0 }
 0x379   : > { %867 = vst.msk [vmem:[%s1432_s24 + $0x88] sm:$0xff] %vm849_vm3, %v834_v1 }
 0x37c   : > { %v835_v10 = vpop.trf.xlu0 }
 0x37d   : > { %868 = vst.msk [vmem:[%s1432_s24 + $0x90] sm:$0xff] %vm849_vm3, %v835_v10 }
 0x380   : > { %v836_v11 = vpop.trf.xlu0 }
 0x381   : > { %869 = vst.msk [vmem:[%s1432_s24 + $0x98] sm:$0xff] %vm849_vm3, %v836_v11 }
 0x384   : > { %v837_v12 = vpop.trf.xlu0 }
 0x385   : > { %870 = vst.msk [vmem:[%s1432_s24 + $0xa0] sm:$0xff] %vm849_vm3, %v837_v12 }
 0x388   : > { %v838_v13 = vpop.trf.xlu0 }
 0x389   : > { %871 = vst.msk [vmem:[%s1432_s24 + $0xa8] sm:$0xff] %vm849_vm3, %v838_v13 }
 0x38c   : > { %v839_v15 = vpop.trf.xlu0 }
 0x38d   : > { %872 = vst.msk [vmem:[%s1432_s24 + $0xb0] sm:$0xff] %vm849_vm3, %v839_v15 }
 0x390   : > { %v840_v16 = vpop.trf.xlu0 }
 0x391   : > { %873 = vst.msk [vmem:[%s1432_s24 + $0xb8] sm:$0xff] %vm849_vm3, %v840_v16 }
 0x394   : > { %v841_v19 = vpop.trf.xlu0 }
 0x395   : > { %874 = vst.msk [vmem:[%s1432_s24 + $0xc0] sm:$0xff] %vm849_vm3, %v841_v19 }
 0x398   : > { %v842_v20 = vpop.trf.xlu0 }
 0x399   : > { %875 = vst.msk [vmem:[%s1432_s24 + $0xc8] sm:$0xff] %vm849_vm3, %v842_v20 }
 0x39c   : > { %v843_v24 = vpop.trf.xlu0 }
 0x39d   : > { %876 = vst.msk [vmem:[%s1432_s24 + $0xd0] sm:$0xff] %vm849_vm3, %v843_v24 }
 0x3a0   : > { %v844_v25 = vpop.trf.xlu0 }
 0x3a1   : > { %877 = vst.msk [vmem:[%s1432_s24 + $0xd8] sm:$0xff] %vm849_vm3, %v844_v25 }
 0x3a4   : > { %v845_v26 = vpop.trf.xlu0 }
 0x3a5   : > { %878 = vst.msk [vmem:[%s1432_s24 + $0xe0] sm:$0xff] %vm849_vm3, %v845_v26 }
 0x3a8   : > { %v846_v27 = vpop.trf.xlu0 }
 0x3a9   : > { %879 = vst.msk [vmem:[%s1432_s24 + $0xe8] sm:$0xff] %vm849_vm3, %v846_v27 }
 0x3ac   : > { %v847_v28 = vpop.trf.xlu0 }
 0x3ad   : > { %880 = vst.msk [vmem:[%s1432_s24 + $0xf0] sm:$0xff] %vm849_vm3, %v847_v28 }
 0x3b0   : > { %v848_v31 = vpop.trf.xlu0 }
 0x3b1   : > { %881 = vst.msk [vmem:[%s1432_s24 + $0xf8] sm:$0xff] %vm849_vm3, %v848_v31 }
 0x3b2 PF: > { %s15_s18 = sadd.s32 1, %s1157_s18  }
 0x3b3   : > { %p12_p4 = scmp.ge.s32.totalorder %s15_s18, 4  }
 0x3b5   :  { %14 = sbr.rel (!%p12_p4) target bundleno = 1 (0x1), region = 70 }

</bundles_post_ra>
